<compile_context>
chip_gen: v7x
topology: tpu7x:2x2x1
jax: 0.10.0
libtpu: 0.0.40
codegen_flags: <defaults>
</compile_context>

<pallas_src>
import jax
import jax.numpy as jnp
from jax.experimental import pallas as pl
from jax.experimental.pallas import tpu as pltpu


def _round_up(x, m):
    return (x + m - 1) // m * m


# ----------------------------------------------------------------------------
# Pallas kernel: fused GEMM + bias + ReLU on one M-tile.
#   w_ref : (Cout, K_pad)  bf16   BN+residual-folded conv weights
#   b_ref : (Cout, 1)      f32    folded bias
#   p_ref : (K_pad, tm)    bf16   im2col patches (transposed, lane-dense)
#   o_ref : (Cout, tm)     f32    output tile (channel-major, lane-dense)
# ----------------------------------------------------------------------------
def _gemm_bias_relu_kernel(w_ref, b_ref, p_ref, o_ref):
    acc = jnp.dot(w_ref[...], p_ref[...], preferred_element_type=jnp.float32)
    o_ref[...] = jnp.maximum(acc + b_ref[...], 0.0).astype(o_ref.dtype)


# ----------------------------------------------------------------------------
# Wrapper: BN + residual folding, im2col, pallas_call, un-flatten.
# ----------------------------------------------------------------------------
def conv3x3x3_residual_forward(x_ncdhw, params, eps=1e-5):
    """x_ncdhw: (N, Cin, D, H, W) f32 -> (N, Cout, D, H, W) f32."""
    N, Cin, D, H, W = x_ncdhw.shape
    Cout = params["w3"].shape[0]

    # ---- fold BatchNorm (eval mode) into conv weight/bias -------------------
    s1 = params["bn1_g"] / jnp.sqrt(params["bn1_v"] + eps)           # (Cout,)
    w3f = params["w3"] * s1[:, None, None, None, None]               # (Cout,Cin,3,3,3)
    b3f = (params["b3"] - params["bn1_m"]) * s1 + params["bn1_b"]    # (Cout,)

    # ---- fold residual path into the 3x3x3 center tap -----------------------
    if Cin != Cout:
        s2 = params["bn2_g"] / jnp.sqrt(params["bn2_v"] + eps)
        w1f = params["w1"][:, :, 0, 0, 0] * s2[:, None]              # (Cout,Cin)
        b1f = (params["b1"] - params["bn2_m"]) * s2 + params["bn2_b"]
        w3f = w3f.at[:, :, 1, 1, 1].add(w1f)
        b3f = b3f + b1f
    else:
        w3f = w3f.at[:, :, 1, 1, 1].add(jnp.eye(Cout, dtype=w3f.dtype))

    K = 27 * Cin
    K_pad = _round_up(K, 128)
    # (Cout, dz, dy, dx, Cin) -> (Cout, K) with k = ((dz*3+dy)*3+dx)*Cin + c
    w_k = jnp.transpose(w3f, (0, 2, 3, 4, 1)).reshape(Cout, K)
    w_k = jnp.pad(w_k, ((0, 0), (0, K_pad - K))).astype(jnp.bfloat16)
    b_k = b3f.reshape(Cout, 1).astype(jnp.float32)

    # ---- im2col (transposed): (K, M), M = N*D*H*W ---------------------------
    xp = jnp.pad(x_ncdhw, ((0, 0), (0, 0), (1, 1), (1, 1), (1, 1)))
    taps = []
    for dz in range(3):
        for dy in range(3):
            for dx in range(3):
                taps.append(xp[:, :, dz:dz + D, dy:dy + H, dx:dx + W])
    p = jnp.stack(taps, axis=0)                       # (27, N, Cin, D, H, W)
    p = jnp.transpose(p, (0, 2, 1, 3, 4, 5))          # (27, Cin, N, D, H, W)
    M = N * D * H * W
    p = p.reshape(K, M)

    # M tile: 128-aligned, sized so one bf16 patch block is ~<= 2 MiB.
    tm = (2 * 1024 * 1024) // (K_pad * 2)
    tm = max(128, min(1024, (tm // 128) * 128))
    tm = min(tm, _round_up(M, 128))
    M_pad = _round_up(M, tm)

    p = jnp.pad(p, ((0, K_pad - K), (0, M_pad - M))).astype(jnp.bfloat16)

    bytes_accessed = int(p.size) * 2 + int(w_k.size) * 2 \
        + int(b_k.size) * 4 + Cout * M_pad * 4

    out = pl.pallas_call(
        _gemm_bias_relu_kernel,
        out_shape=jax.ShapeDtypeStruct((Cout, M_pad), jnp.float32),
        grid_spec=pltpu.PrefetchScalarGridSpec(
            num_scalar_prefetch=0,
            grid=(M_pad // tm,),
            in_specs=[
                pl.BlockSpec((Cout, K_pad), lambda i: (0, 0)),   # weights (resident)
                pl.BlockSpec((Cout, 1), lambda i: (0, 0)),       # bias    (resident)
                pl.BlockSpec((K_pad, tm), lambda i: (0, i)),     # patches tile
            ],
            out_specs=pl.BlockSpec((Cout, tm), lambda i: (0, i)),
        ),
        compiler_params=pltpu.CompilerParams(
            dimension_semantics=("parallel",),
            vmem_limit_bytes=32 * 1024 * 1024),
        cost_estimate=pl.CostEstimate(
            flops=2 * M_pad * K_pad * Cout,
            transcendentals=0,
            bytes_accessed=bytes_accessed),
    )(w_k, b_k, p)

    out = out[:, :M].reshape(Cout, N, D, H, W)
    return jnp.transpose(out, (1, 0, 2, 3, 4))        # (N, Cout, D, H, W)


# ----------------------------------------------------------------------------
# Deterministic parameter init (shapes follow the nn.Module __init__).
# ----------------------------------------------------------------------------
def init_params(key, in_channels, out_channels):
    ks = jax.random.split(key, 12)
    return {
        # conv1: Conv3d(Cin, Cout, 3, 1, 1)
        "w3": jax.random.normal(ks[0], (out_channels, in_channels, 3, 3, 3),
                                jnp.float32) * 0.1,
        "b3": jax.random.normal(ks[1], (out_channels,), jnp.float32) * 0.1,
        # BatchNorm3d(Cout) — eval-mode running stats
        "bn1_g": 1.0 + 0.1 * jax.random.normal(ks[2], (out_channels,), jnp.float32),
        "bn1_b": 0.1 * jax.random.normal(ks[3], (out_channels,), jnp.float32),
        "bn1_m": 0.1 * jax.random.normal(ks[4], (out_channels,), jnp.float32),
        "bn1_v": 1.0 + 0.1 * jax.random.uniform(ks[5], (out_channels,), jnp.float32),
        # mchannel: Conv3d(Cin, Cout, 1, 1) + BatchNorm3d(Cout)
        "w1": jax.random.normal(ks[6], (out_channels, in_channels, 1, 1, 1),
                                jnp.float32) * 0.1,
        "b1": jax.random.normal(ks[7], (out_channels,), jnp.float32) * 0.1,
        "bn2_g": 1.0 + 0.1 * jax.random.normal(ks[8], (out_channels,), jnp.float32),
        "bn2_b": 0.1 * jax.random.normal(ks[9], (out_channels,), jnp.float32),
        "bn2_m": 0.1 * jax.random.normal(ks[10], (out_channels,), jnp.float32),
        "bn2_v": 1.0 + 0.1 * jax.random.uniform(ks[11], (out_channels,), jnp.float32),
    }


# ----------------------------------------------------------------------------
# Pure-JAX (f32) reference with the same eval-mode BN semantics.
# ----------------------------------------------------------------------------
def reference_forward(x, params, eps=1e-5):
    Cin = x.shape[1]
    Cout = params["w3"].shape[0]

    def bn(y, g, b, m, v):
        shp = (1, -1, 1, 1, 1)
        return ((y - m.reshape(shp)) / jnp.sqrt(v.reshape(shp) + eps)
                * g.reshape(shp) + b.reshape(shp))

    dn = ("NCDHW", "OIDHW", "NCDHW")
    y = jax.lax.conv_general_dilated(
        x, params["w3"], window_strides=(1, 1, 1),
        padding=((1, 1), (1, 1), (1, 1)), dimension_numbers=dn)
    y = y + params["b3"].reshape(1, -1, 1, 1, 1)
    y = bn(y, params["bn1_g"], params["bn1_b"], params["bn1_m"], params["bn1_v"])

    if Cin != Cout:
        r = jax.lax.conv_general_dilated(
            x, params["w1"], window_strides=(1, 1, 1),
            padding=((0, 0), (0, 0), (0, 0)), dimension_numbers=dn)
        r = r + params["b1"].reshape(1, -1, 1, 1, 1)
        r = bn(r, params["bn2_g"], params["bn2_b"], params["bn2_m"], params["bn2_v"])
    else:
        r = x
    return jnp.maximum(y + r, 0.0)


if __name__ == "__main__":
    key = jax.random.PRNGKey(0)
    k_x, k_p = jax.random.split(key)

    N, Cin, D, H, W = 2, 4, 4, 8, 8
    Cout = 8  # != Cin -> exercises the folded 1x1x1-conv residual path

    x = jax.random.normal(k_x, (N, Cin, D, H, W), jnp.float32)
    params = init_params(k_p, Cin, Cout)

    out = jax.block_until_ready(conv3x3x3_residual_forward(x, params))
    ref = reference_forward(x, params)

    assert out.shape == (N, Cout, D, H, W)
    err = float(jnp.max(jnp.abs(out - ref)))
    tol = 5e-2 * (1.0 + float(jnp.max(jnp.abs(ref))))  # bf16 operands, f32 accumulation
    assert err < tol, (err, tol)

    print("KERNEL_OK")
</pallas_src>

<mosaic_0001>
module attributes {stable_mosaic.version = 11 : i64} {
  func.func @_gemm_bias_relu_kernel(%arg0: i32, %arg1: memref<8x128xbf16, #tpu.memory_space<vmem>>, %arg2: memref<8x1xf32, #tpu.memory_space<vmem>>, %arg3: memref<128x512xbf16, #tpu.memory_space<vmem>>, %arg4: memref<8x512xf32, #tpu.memory_space<vmem>>) attributes {dimension_semantics = [#tpu.dimension_semantics<parallel>], iteration_bounds = array<i64: 1>, scalar_prefetch = 0 : i64, scratch_operands = 0 : i64, tpu.core_type = #tpu.core_type<tc>, window_params = [{pipeline_mode = #tpu.pipeline_mode<synchronous>, transform_indices = @transform_0, window_bounds = array<i64: 8, 128>}, {pipeline_mode = #tpu.pipeline_mode<synchronous>, transform_indices = @transform_1, window_bounds = array<i64: 8, 1>}, {transform_indices = @transform_2, window_bounds = array<i64: 128, 512>}, {transform_indices = @transform_3, window_bounds = array<i64: 8, 512>}]} {
    %c0 = arith.constant 0 : index
    %c0_0 = arith.constant 0 : index
    %0 = vector.load %arg1[%c0, %c0_0] : memref<8x128xbf16, #tpu.memory_space<vmem>>, vector<8x128xbf16>
    %c0_1 = arith.constant 0 : index
    %c0_2 = arith.constant 0 : index
    %1 = vector.load %arg3[%c0_1, %c0_2] : memref<128x512xbf16, #tpu.memory_space<vmem>>, vector<128x512xbf16>
    %cst = arith.constant dense<0.000000e+00> : vector<8x512xf32>
    %2 = tpu.matmul %0, %1, %cst {dimension_numbers = #tpu.dot_dimension_numbers<[1], [0], [0], [1], [0, 0, 1, 1], [], []>} : vector<8x128xbf16>, vector<128x512xbf16>, vector<8x512xf32> -> vector<8x512xf32>
    %c0_3 = arith.constant 0 : index
    %c0_4 = arith.constant 0 : index
    %3 = vector.load %arg2[%c0_3, %c0_4] : memref<8x1xf32, #tpu.memory_space<vmem>>, vector<8x1xf32>
    %4 = vector.broadcast %3 : vector<8x1xf32> to vector<8x512xf32>
    %5 = arith.addf %2, %4 : vector<8x512xf32>
    %cst_5 = arith.constant 0.000000e+00 : f32
    %6 = vector.broadcast %cst_5 : f32 to vector<8x512xf32>
    %7 = arith.maximumf %5, %6 : vector<8x512xf32>
    %c0_6 = arith.constant 0 : index
    %c0_7 = arith.constant 0 : index
    %8 = vector.load %arg4[%c0_6, %c0_7] : memref<8x512xf32, #tpu.memory_space<vmem>>, vector<8x512xf32>
    tpu.vector_store %arg4[%c0_6, %c0_7], %7 {strides = array<i32>} : memref<8x512xf32, #tpu.memory_space<vmem>>, vector<8x512xf32>,
    return
  }
  func.func @transform_0(%arg0: i32) -> (i32, i32) {
    %c0_i32 = arith.constant 0 : i32
    %c0_i32_0 = arith.constant 0 : i32
    %c0_i32_1 = arith.constant 0 : i32
    return %c0_i32, %c0_i32_0 : i32, i32
  }
  func.func @transform_1(%arg0: i32) -> (i32, i32) {
    %c0_i32 = arith.constant 0 : i32
    %c0_i32_0 = arith.constant 0 : i32
    %c0_i32_1 = arith.constant 0 : i32
    return %c0_i32, %c0_i32_0 : i32, i32
  }
  func.func @transform_2(%arg0: i32) -> (i32, i32) {
    %c0_i32 = arith.constant 0 : i32
    %c0_i32_0 = arith.constant 0 : i32
    return %c0_i32, %arg0 : i32, i32
  }
  func.func @transform_3(%arg0: i32) -> (i32, i32) {
    %c0_i32 = arith.constant 0 : i32
    %c0_i32_0 = arith.constant 0 : i32
    return %c0_i32, %arg0 : i32, i32
  }
}

</mosaic_0001>

<bundles_post_ra>
// kernel: tpu_custom_call.1
= control target key start
LH: loop header
LB: loop body
LE: loop exit
PB: predicated region body
PF: predicated region fallthrough
CT: control target
= control target key end

     0   :  { %8 = vsyncpa [#allocation3], 0  ;;  %s523_s0 = inlined_call_operand.vmem [shape: bf16[8,128], index: 0, kind: input, shape index: {}]   ;;  %s524_s1 = inlined_call_operand.vmem [shape: f32[8,1], index: 1, kind: input, shape index: {}]   ;;  %s525_s2 = inlined_call_operand.hbm [shape: bf16[128,512], index: 2, kind: input, shape index: {}]   ;;  %s526_s3 = inlined_call_operand.hbm [shape: f32[8,512], index: 3, kind: output, shape index: {}]  }
   0x1   :  { %9 = vsyncpa [#allocation4], 0  ;;  %s468_s12 = smov [#allocation2]   ;;  %s420_s16 = scalar_lea.hbm %s525_s2, 4096 }
   0x2   :  { %s19_s13 = sshll.u32 %s468_s12, 4  ;;  %p421_p0 = scmp.ne.s32.totalorder %s525_s2, %s420_s16  ;;  %s20_s13 = int_to_ptr.vmem [resolvable:$true] %s19_s13 }
   0x3   :  { %p424_p1 = scmp.lt.u32.totalorder %s420_s16, %s525_s2 }
   0x5   :  { %p426_p2 = pnand %p424_p1, %p421_p0 }
   0x7   :  { %429 = shalt.err (!%p426_p2)
}
   0x8   :  { %s430_s21 = scalar_lea.vmem %s20_s13, 4096  ;;  %p435_p4 = scmp.lt.s32.totalorder %s20_s13, %s20_s13 }
   0x9   :  { %p431_p3 = scmp.ne.s32.totalorder %s20_s13, %s430_s21  ;;  %p436_p5 = scmp.lt.s32.totalorder %s430_s21, %s430_s21 }
   0xb   :  { %p437_p6 = por %p436_p5, %p435_p4 }
   0xd   :  { %p438_p7 = pnand %p437_p6, %p431_p3 }
   0xf   :  { %441 = shalt.err (!%p438_p7)
}
  0x10   :  { %s469_s22 = smov 256   ;;  %s470_s23 = smov 16  }
  0x11   :  { %25 = dma.hbm_to_vmem [thread:$0]  %s525_s2, 4096, %s20_s13, [#allocation3], %s469_s22, %s469_s22, %s470_s23  }
  0x12   :  { %464 = dma.done.wait [#allocation3], 4096  }
  0x13   :  { %465 = vsyncadd [#allocation3], 4294963200  ;;  %v471_v0 = vmov 0   ;;  %v372_v1 = vld [vmem:[#allocation2 + $0x4] ss:$16 sps:$4 sm:$0xff]  }
  0x14   :  { %261 = vmatprep.mubr.bf16.mxu0 %v471_v0  ;;  %302 = vmatprep.mubr.bf16.mxu1 %v471_v0  ;;  %v374_v2 = vld [vmem:[#allocation2 + $0xc] ss:$16 sps:$4 sm:$0xff]   ;;  %v376_v3 = vld [vmem:[#allocation2] ss:$16 sps:$4 sm:$0xff]   ;;  %v377_v4 = vld [vmem:[#allocation2 + $0x8] ss:$16 sps:$4 sm:$0xff]  }
  0x15   :  { %371 = vset.pattern.permute.xlu0 %v471_v0  ;;  %229 = vmatprep.subr.bf16.mxu0 %v372_v1  ;;  %v378_v5 = vld [vmem:[#allocation2 + $0x24] ss:$16 sps:$4 sm:$0xff]   ;;  %v380_v6 = vld [vmem:[#allocation2 + $0x2c] ss:$16 sps:$4 sm:$0xff]   ;;  %v382_v7 = vld [vmem:[#allocation2 + $0x20] ss:$16 sps:$4 sm:$0xff]  }
  0x16   :  { %270 = vmatprep.subr.bf16.mxu1 %v374_v2  ;;  %230 = vmatpush1.bf16.msra.mxu0 %v376_v3  ;;  %v383_v8 = vld [vmem:[#allocation2 + $0x28] ss:$16 sps:$4 sm:$0xff]   ;;  %v384_v9 = vld [vmem:[#allocation2 + $0x44] ss:$16 sps:$4 sm:$0xff]   ;;  %v386_v10 = vld [vmem:[#allocation2 + $0x4c] ss:$16 sps:$4 sm:$0xff]  }
  0x17   :  { %271 = vmatpush1.bf16.msra.mxu1 %v377_v4  ;;  %231 = vmatprep.subr.bf16.mxu0 %v378_v5  ;;  %v388_v11 = vld [vmem:[#allocation2 + $0x40] ss:$16 sps:$4 sm:$0xff]   ;;  %v389_v12 = vld [vmem:[#allocation2 + $0x48] ss:$16 sps:$4 sm:$0xff]   ;;  %v390_v13 = vld [vmem:[#allocation2 + $0x64] ss:$16 sps:$4 sm:$0xff]  }
  0x18   :  { %272 = vmatprep.subr.bf16.mxu1 %v380_v6  ;;  %v392_v14 = vld [vmem:[#allocation2 + $0x6c] ss:$16 sps:$4 sm:$0xff]   ;;  %v394_v15 = vld [vmem:[#allocation2 + $0x60] ss:$16 sps:$4 sm:$0xff]   ;;  %v395_v16 = vld [vmem:[#allocation2 + $0x68] ss:$16 sps:$4 sm:$0xff]  }
  0x19   :  { %v396_v17 = vld [vmem:[#allocation2 + $0x84] ss:$16 sps:$4 sm:$0xff]   ;;  %v398_v18 = vld [vmem:[#allocation2 + $0x8c] ss:$16 sps:$4 sm:$0xff]   ;;  %v400_v19 = vld [vmem:[#allocation2 + $0x80] ss:$16 sps:$4 sm:$0xff]  }
  0x1a   :  { %232 = vmatpush1.bf16.msra.mxu0 %v382_v7  ;;  %v401_v20 = vld [vmem:[#allocation2 + $0x88] ss:$16 sps:$4 sm:$0xff]   ;;  %v402_v21 = vld [vmem:[#allocation2 + $0xa4] ss:$16 sps:$4 sm:$0xff]   ;;  %v404_v22 = vld [vmem:[#allocation2 + $0xac] ss:$16 sps:$4 sm:$0xff]  }
  0x1b   :  { %273 = vmatpush1.bf16.msra.mxu1 %v383_v8  ;;  %233 = vmatprep.subr.bf16.mxu0 %v384_v9  ;;  %v406_v23 = vld [vmem:[#allocation2 + $0xa0] ss:$16 sps:$4 sm:$0xff]   ;;  %v407_v24 = vld [vmem:[#allocation2 + $0xa8] ss:$16 sps:$4 sm:$0xff]   ;;  %v408_v25 = vld [vmem:[#allocation2 + $0xc4] ss:$16 sps:$4 sm:$0xff]  }
  0x1c   :  { %274 = vmatprep.subr.bf16.mxu1 %v386_v10  ;;  %v410_v26 = vld [vmem:[#allocation2 + $0xcc] ss:$16 sps:$4 sm:$0xff]   ;;  %v63_v27 = vld [vmem:[%s524_s1] sm:$0xff]  ;;  %v413_v29 = vld [vmem:[#allocation2 + $0xc8] ss:$16 sps:$4 sm:$0xff]   ;;  %s472_s1 = smov [#allocation5]  }
  0x1d   :  { %66 = vperm.xlu0 %371, %v63_v27   ;;  %v412_v28 = vld [vmem:[#allocation2 + $0xc0] ss:$16 sps:$4 sm:$0xff]   ;;  %v414_v30 = vld [vmem:[#allocation2 + $0xe4] ss:$16 sps:$4 sm:$0xff]   ;;  %v416_v31 = vld [vmem:[#allocation2 + $0xec] ss:$16 sps:$4 sm:$0xff]  }
  0x1e   :  { %234 = vmatpush1.bf16.msra.mxu0 %v388_v11  ;;  %v418_v32 = vld [vmem:[#allocation2 + $0xe0] ss:$16 sps:$4 sm:$0xff]   ;;  %v419_v33 = vld [vmem:[#allocation2 + $0xe8] ss:$16 sps:$4 sm:$0xff]   ;;  %s325_s29 = sshll.u32 %s472_s1, 4  ;;  %s326_s29 = int_to_ptr.vmem [resolvable:$true] %s325_s29 }
  0x1f   :  { %275 = vmatpush1.bf16.msra.mxu1 %v389_v12  ;;  %235 = vmatprep.subr.bf16.mxu0 %v390_v13  ;;  %v30_v34 = vld [vmem:[%s523_s0] sm:$0xf]  ;;  %s442_s0 = scalar_lea.vmem %s326_s29, 512  ;;  %p447_p9 = scmp.lt.s32.totalorder %s326_s29, %s326_s29 }
  0x20   :  { %276 = vmatprep.subr.bf16.mxu1 %v392_v14  ;;  %p443_p8 = scmp.ne.s32.totalorder %s326_s29, %s442_s0  ;;  %p448_p10 = scmp.lt.s32.totalorder %s442_s0, %s442_s0 }
  0x22   :  { %236 = vmatpush1.bf16.msra.mxu0 %v394_v15  ;;  %p449_p11 = por %p448_p10, %p447_p9 }
  0x23   :  { %277 = vmatpush1.bf16.msra.mxu1 %v395_v16  ;;  %237 = vmatprep.subr.bf16.mxu0 %v396_v17 }
  0x24   :  { %278 = vmatprep.subr.bf16.mxu1 %v398_v18  ;;  %p450_p12 = pnand %p449_p11, %p443_p8 }
  0x26   :  { %238 = vmatpush1.bf16.msra.mxu0 %v400_v19 }
  0x27   :  { %279 = vmatpush1.bf16.msra.mxu1 %v401_v20  ;;  %239 = vmatprep.subr.bf16.mxu0 %v402_v21 }
  0x28   :  { %280 = vmatprep.subr.bf16.mxu1 %v404_v22 }
  0x2a   :  { %240 = vmatpush1.bf16.msra.mxu0 %v406_v23 }
  0x2b   :  { %281 = vmatpush1.bf16.msra.mxu1 %v407_v24  ;;  %241 = vmatprep.subr.bf16.mxu0 %v408_v25 }
  0x2c   :  { %282 = vmatprep.subr.bf16.mxu1 %v410_v26 }
  0x2e   :  { %242 = vmatpush1.bf16.msra.mxu0 %v412_v28 }
  0x2f   :  { %283 = vmatpush1.bf16.msra.mxu1 %v413_v29  ;;  %243 = vmatprep.subr.bf16.mxu0 %v414_v30 }
  0x30   :  { %284 = vmatprep.subr.bf16.mxu1 %v416_v31 }
  0x32   :  { %244 = vmatpush1.bf16.msra.mxu0 %v418_v32 }
  0x33   :  { %285 = vmatpush1.bf16.msra.mxu1 %v419_v33 }
  0x35   :  { %262 = vmatmul.mubr.bf16.vlgmr.msra.gmra.mrb[0].mxu0 %v30_v34 }
  0x36   :  { %303 = vmatmul.mubr.bf16.vlgmr.msra.gmra.mrb[0].mxu1 %v30_v34 }
  0x9c   :  { %v67_v35 = vpop.permute.xlu0 %66 }
 0x108   :  { %v263_v36 = vpop.f32.mrb[0].mxu0 }
 0x109   :  { %v304_v37 = vpop.f32.mrb[0].mxu1  ;;  %v264_v38 = vadd.f32 %v263_v36, %v67_v35  ;;  %v265_v40 = vpop.f32.mrb[1].mxu0 }
 0x10a   :  { %v305_v39 = vadd.f32 %v304_v37, %v67_v35  ;;  %v306_v41 = vpop.f32.mrb[1].mxu1  ;;  %v266_v42 = vadd.f32 %v265_v40, %v67_v35  ;;  %v267_v44 = vpop.f32.mrb[2].mxu0 }
 0x10b   :  { %v307_v43 = vadd.f32 %v306_v41, %v67_v35  ;;  %v308_v45 = vpop.f32.mrb[2].mxu1  ;;  %v311_v46 = vmax.f32 %v264_v38, 0.0  ;;  %v268_v48 = vpop.f32.mrb[3].mxu0 }
 0x10c   :  { %v313_v47 = vmax.f32 %v305_v39, 0.0  ;;  %v309_v49 = vpop.f32.mrb[3].mxu1  ;;  %v312_v50 = vmax.f32 %v266_v42, 0.0 }
 0x10d   :  { %v314_v51 = vmax.f32 %v307_v43, 0.0  ;;  %315 = vst [vmem:[#allocation5] sm:$0xff] %v311_v46 }
 0x10e   :  { %317 = vst [vmem:[#allocation5 + $0x10] sm:$0xff] %v313_v47  ;;  %316 = vst [vmem:[#allocation5 + $0x8] sm:$0xff] %v312_v50 }
 0x10f   :  { %318 = vst [vmem:[#allocation5 + $0x18] sm:$0xff] %v314_v51 }
 0x110   :  { %453 = shalt.err (!%p450_p12)
}
 0x111   :  { %s454_s5 = scalar_lea.hbm %s526_s3, 512 }
 0x112   :  { %p455_p13 = scmp.ne.s32.totalorder %s526_s3, %s454_s5  ;;  %p458_p0 = scmp.lt.u32.totalorder %s454_s5, %s526_s3 }
 0x114   :  { %p460_p1 = pnand %p458_p0, %p455_p13 }
 0x116   :  { %463 = shalt.err (!%p460_p1)
}
 0x117   :  { %328 = dma.vmem_to_hbm [thread:$0]  %s326_s29, 512, %s526_s3, [#allocation4]  }
 0x118   :  { %466 = dma.done.wait [#allocation4], 512  }
 0x119   :  { %467 = vsyncadd [#allocation4], 4294966784 }
 0x11a   :  { %332 = vsyncpa [#allocation3], 1 }
 0x11b   :  { %333 = vsyncpa [#allocation4], 1 }

</bundles_post_ra>
